<compile_context>
chip_gen: v7x
topology: tpu7x:2x2x1
jax: 0.10.0
libtpu: 0.0.40
codegen_flags: <defaults>
</compile_context>

<pallas_src>
import functools

import jax
import jax.numpy as jnp
from jax.experimental import pallas as pl
from jax.experimental.pallas import tpu as pltpu

LANE = 128        # vreg lane width
SUBLANES = 8      # f32 sublanes per vreg
ROW_ALIGN = 16    # keep tiles bf16-friendly (16,128) as well as f32 (8,128)
MAX_TILE_R = 2048  # 2048 x 128 f32 = 1 MiB per tile per input
NUM_SPLITS = 2     # leading "parallel" axis (2 TCs on v7x; harmless on 1-TC chips)


def _round_up(a, b):
    return -(-a // b) * b


def _stft_mag_loss_kernel(x_ref, y_ref, out_ref, *, log, log_eps, log_fac,
                          distance):
    i = pl.program_id(1)

    # Zero the resident (1, 8, 128) partial-sum block on the first step of
    # this split's reduction.
    @pl.when(i == 0)
    def _():
        out_ref[...] = jnp.zeros_like(out_ref)

    x = x_ref[...].astype(jnp.float32)
    y = y_ref[...].astype(jnp.float32)

    if log:
        xc = jnp.maximum(x, log_eps)   # torch.clamp(x, min=log_eps)
        yc = jnp.maximum(y, log_eps)
        if log_fac > 0.0:
            # log(f*a) - log(f*b) == log(a) - log(b) for f > 0, so the log_fac
            # multiplies cancel in the loss; skip them (2 fewer vmul / vreg pair).
            x = jnp.log(xc)
            y = jnp.log(yc)
        else:
            # Degenerate log_fac (<= 0): keep torch's NaN semantics exactly.
            x = jnp.log(log_fac * xc)
            y = jnp.log(log_fac * yc)

    d = x - y
    if distance == "L1":
        e = jnp.abs(d)
    elif distance == "L2":
        e = d * d
    else:
        raise ValueError(f"Invalid distance: '{distance}'.")

    # Fold the (1, tile_r, 128) tile into an (8, 128) vreg partial sum:
    # pure vreg-wise VPU adds, no cross-lane reduce in the hot loop.
    out_ref[...] += e.reshape(-1, SUBLANES, LANE).sum(axis=0)[None]


def stft_magnitude_loss(x_mag, y_mag, *, log=True, log_eps=0.0, log_fac=1.0,
                        distance="L1", reduction="mean"):
    assert x_mag.shape == y_mag.shape, "x_mag and y_mag must match"
    if distance not in ("L1", "L2"):
        raise ValueError(f"Invalid distance: '{distance}'.")
    n_total = x_mag.size
    if reduction == "mean":
        inv_scale = 1.0 / float(n_total)
    elif reduction == "sum":
        inv_scale = 1.0
    else:
        raise ValueError(f"Invalid reduction: '{reduction}'.")

    # Tiling: lane-dense rows of 128, split across NUM_SPLITS, tiles of up to
    # MAX_TILE_R rows (multiple of 16 so bf16 inputs also tile cleanly).
    rows = -(-n_total // LANE)
    rows_per_split = _round_up(-(-rows // NUM_SPLITS), ROW_ALIGN)
    tile_r = min(MAX_TILE_R, rows_per_split)
    rows_per_split = _round_up(rows_per_split, tile_r)
    tiles_per_split = rows_per_split // tile_r
    n_padded = NUM_SPLITS * rows_per_split * LANE

    # Flatten; pad BOTH inputs with the same value (1.0) so the padded tail
    # contributes exactly zero to the distance. Stream in native dtype
    # (no f32 up-cast in the wrapper; the kernel casts after load).
    xf = x_mag.reshape(-1)
    yf = y_mag.reshape(-1)
    pad = n_padded - n_total
    if pad:
        xf = jnp.pad(xf, (0, pad), constant_values=1.0)
        yf = jnp.pad(yf, (0, pad), constant_values=1.0)
    x3 = xf.reshape(NUM_SPLITS, rows_per_split, LANE)
    y3 = yf.reshape(NUM_SPLITS, rows_per_split, LANE)

    kernel = functools.partial(
        _stft_mag_loss_kernel,
        log=log, log_eps=float(log_eps), log_fac=float(log_fac),
        distance=distance)

    partials = pl.pallas_call(
        kernel,
        out_shape=jax.ShapeDtypeStruct((NUM_SPLITS, SUBLANES, LANE),
                                       jnp.float32),
        grid_spec=pltpu.PrefetchScalarGridSpec(
            num_scalar_prefetch=0,
            grid=(NUM_SPLITS, tiles_per_split),
            in_specs=[
                pl.BlockSpec((1, tile_r, LANE), lambda c, i: (c, i, 0)),
                pl.BlockSpec((1, tile_r, LANE), lambda c, i: (c, i, 0)),
            ],
            out_specs=pl.BlockSpec((1, SUBLANES, LANE),
                                   lambda c, i: (c, 0, 0)),
        ),
        compiler_params=pltpu.CompilerParams(
            dimension_semantics=("parallel", "arbitrary"),
            vmem_limit_bytes=32 * 1024 * 1024),
    )(x3, y3)

    # Tiny final cross-lane reduce over NUM_SPLITS*8*128 partial sums plus the
    # reduction scale (1/N for "mean", 1 for "sum").
    return jnp.sum(partials) * inv_scale


def _reference(x_mag, y_mag, *, log=True, log_eps=0.0, log_fac=1.0,
               distance="L1", reduction="mean"):
    x = x_mag.astype(jnp.float32)
    y = y_mag.astype(jnp.float32)
    if log:
        x = jnp.log(log_fac * jnp.maximum(x, log_eps))
        y = jnp.log(log_fac * jnp.maximum(y, log_eps))
    e = jnp.abs(x - y) if distance == "L1" else (x - y) ** 2
    return jnp.mean(e) if reduction == "mean" else jnp.sum(e)


if __name__ == "__main__":
    key = jax.random.PRNGKey(0)
    kx, ky = jax.random.split(key)

    # Small STFT-magnitude-like inputs: [batch=2, freq_bins=16, frames=128].
    shape = (2, 16, 128)
    # Magnitudes are nonnegative; keep strictly positive so log() is finite.
    x_mag = jax.random.uniform(kx, shape, jnp.float32, minval=1e-3, maxval=4.0)
    y_mag = jax.random.uniform(ky, shape, jnp.float32, minval=1e-3, maxval=4.0)

    loss = jax.block_until_ready(stft_magnitude_loss(x_mag, y_mag))
    ref = _reference(x_mag, y_mag)
    assert jnp.allclose(loss, ref, rtol=1e-5, atol=1e-6), (loss, ref)

    # Non-aligned shape (exercises the padded tail) + L2 / sum variant.
    shape2 = (2, 9, 83)
    x2 = jax.random.uniform(kx, shape2, jnp.float32, minval=1e-3, maxval=4.0)
    y2 = jax.random.uniform(ky, shape2, jnp.float32, minval=1e-3, maxval=4.0)
    loss2 = jax.block_until_ready(
        stft_magnitude_loss(x2, y2, distance="L2", reduction="sum"))
    ref2 = _reference(x2, y2, distance="L2", reduction="sum")
    assert jnp.allclose(loss2, ref2, rtol=1e-5, atol=1e-5), (loss2, ref2)

    print("KERNEL_OK")
</pallas_src>

<mosaic_0001>
module attributes {stable_mosaic.version = 11 : i64} {
  func.func @_stft_mag_loss_kernel(%arg0: i32, %arg1: i32, %arg2: memref<1x16x128xf32, #tpu.memory_space<vmem>>, %arg3: memref<1x16x128xf32, #tpu.memory_space<vmem>>, %arg4: memref<1x8x128xf32, #tpu.memory_space<vmem>>) attributes {dimension_semantics = [#tpu.dimension_semantics<parallel>, #tpu.dimension_semantics<arbitrary>], iteration_bounds = array<i64: 2, 1>, scalar_prefetch = 0 : i64, scratch_operands = 0 : i64, tpu.core_type = #tpu.core_type<tc>, window_params = [{transform_indices = @transform_0, window_bounds = array<i64: 1, 16, 128>}, {transform_indices = @transform_1, window_bounds = array<i64: 1, 16, 128>}, {transform_indices = @transform_2, window_bounds = array<i64: 1, 8, 128>}]} {
    %c0_i32 = arith.constant 0 : i32
    %0 = arith.cmpi eq, %arg1, %c0_i32 : i32
    %1 = arith.extui %0 : i1 to i32
    %c0_i32_0 = arith.constant 0 : i32
    %2 = arith.cmpi ne, %1, %c0_i32_0 : i32
    scf.if %2 {
      %cst_14 = arith.constant 0.000000e+00 : f32
      %19 = vector.broadcast %cst_14 : f32 to vector<1x8x128xf32>
      %c0_15 = arith.constant 0 : index
      %c0_16 = arith.constant 0 : index
      %c0_17 = arith.constant 0 : index
      %20 = vector.load %arg4[%c0_15, %c0_16, %c0_17] : memref<1x8x128xf32, #tpu.memory_space<vmem>>, vector<1x8x128xf32>
      tpu.vector_store %arg4[%c0_15, %c0_16, %c0_17], %19 {strides = array<i32>} : memref<1x8x128xf32, #tpu.memory_space<vmem>>, vector<1x8x128xf32>,
    } else {
    }
    %c0 = arith.constant 0 : index
    %c0_1 = arith.constant 0 : index
    %c0_2 = arith.constant 0 : index
    %3 = vector.load %arg2[%c0, %c0_1, %c0_2] : memref<1x16x128xf32, #tpu.memory_space<vmem>>, vector<1x16x128xf32>
    %c0_3 = arith.constant 0 : index
    %c0_4 = arith.constant 0 : index
    %c0_5 = arith.constant 0 : index
    %4 = vector.load %arg3[%c0_3, %c0_4, %c0_5] : memref<1x16x128xf32, #tpu.memory_space<vmem>>, vector<1x16x128xf32>
    %cst = arith.constant 0.000000e+00 : f32
    %5 = vector.broadcast %cst : f32 to vector<1x16x128xf32>
    %6 = arith.maximumf %3, %5 : vector<1x16x128xf32>
    %cst_6 = arith.constant 0.000000e+00 : f32
    %7 = vector.broadcast %cst_6 : f32 to vector<1x16x128xf32>
    %8 = arith.maximumf %4, %7 : vector<1x16x128xf32>
    %9 = math.log %6 : vector<1x16x128xf32>
    %10 = math.log %8 : vector<1x16x128xf32>
    %11 = arith.subf %9, %10 : vector<1x16x128xf32>
    %12 = math.absf %11 : vector<1x16x128xf32>
    %c0_7 = arith.constant 0 : index
    %c0_8 = arith.constant 0 : index
    %c0_9 = arith.constant 0 : index
    %13 = vector.load %arg4[%c0_7, %c0_8, %c0_9] : memref<1x8x128xf32, #tpu.memory_space<vmem>>, vector<1x8x128xf32>
    %14 = vector.shape_cast %12 : vector<1x16x128xf32> to vector<2x8x128xf32>
    %cst_10 = arith.constant dense<0.000000e+00> : vector<8x128xf32>
    %15 = vector.multi_reduction <add>, %14, %cst_10 [0] : vector<2x8x128xf32> to vector<8x128xf32>
    %16 = vector.shape_cast %15 : vector<8x128xf32> to vector<1x8x128xf32>
    %17 = arith.addf %13, %16 : vector<1x8x128xf32>
    %c0_11 = arith.constant 0 : index
    %c0_12 = arith.constant 0 : index
    %c0_13 = arith.constant 0 : index
    %18 = vector.load %arg4[%c0_11, %c0_12, %c0_13] : memref<1x8x128xf32, #tpu.memory_space<vmem>>, vector<1x8x128xf32>
    tpu.vector_store %arg4[%c0_11, %c0_12, %c0_13], %17 {strides = array<i32>} : memref<1x8x128xf32, #tpu.memory_space<vmem>>, vector<1x8x128xf32>,
    return
  }
  func.func @transform_0(%arg0: i32, %arg1: i32) -> (i32, i32, i32) {
    %c0_i32 = arith.constant 0 : i32
    %c0_i32_0 = arith.constant 0 : i32
    return %arg0, %arg1, %c0_i32 : i32, i32, i32
  }
  func.func @transform_1(%arg0: i32, %arg1: i32) -> (i32, i32, i32) {
    %c0_i32 = arith.constant 0 : i32
    %c0_i32_0 = arith.constant 0 : i32
    return %arg0, %arg1, %c0_i32 : i32, i32, i32
  }
  func.func @transform_2(%arg0: i32, %arg1: i32) -> (i32, i32, i32) {
    %c0_i32 = arith.constant 0 : i32
    %c0_i32_0 = arith.constant 0 : i32
    %c0_i32_1 = arith.constant 0 : i32
    return %arg0, %c0_i32, %c0_i32_0 : i32, i32, i32
  }
}

</mosaic_0001>

<bundles_post_ra>
// kernel: tpu_custom_call.1
= control target key start
LH: loop header
LB: loop body
LE: loop exit
PB: predicated region body
PF: predicated region fallthrough
CT: control target
= control target key end

     0   :  { %7 = vsyncpa [#allocation3], 0  ;;  %s875_s0 = inlined_call_operand.hbm [shape: f32[2,16,128], index: 0, kind: input, shape index: {}]   ;;  %s876_s1 = inlined_call_operand.hbm [shape: f32[2,16,128], index: 1, kind: input, shape index: {}]   ;;  %s877_s2 = inlined_call_operand.hbm [shape: f32[2,8,128], index: 2, kind: output, shape index: {}]  }
   0x1   :  { %9 = vsyncpa [#allocation3 + $0x1], 0 }
   0x2   :  { %10 = vsyncpa [#allocation6], 0 }
   0x3   :  { %12 = vsyncpa [#allocation6 + $0x1], 0 }
   0x4   :  { %13 = vsyncpa [#allocation4], 0 }
   0x5   :  { %15 = vsyncpa [#allocation4 + $0x1], 0  ;;  %s640_s9 = smov 0   ;;  %s642_s10 = smov 0  }
   0x6   :  { %s644_s11 = smov 0   ;;  %s646_s12 = smov 0  }
   0x7   :  { %s648_s13 = smov 0   ;;  %s650_s14 = smov 0  }
   0x8 LB: > { %s374_s15 = sadd.s32 4294967295, %s618_s14   ;;  %s375_s16 = sadd.s32 4294967294, %s618_s14   ;;  %s618_s14 = sphi %s650_s14, %s21_s14   ;;  %s614_s13 = sphi %s648_s13, %s895_s13   ;;  %s610_s12 = sphi %s646_s12, %s894_s12   ;;  %s606_s11 = sphi %s644_s11, %s893_s11   ;;  %s602_s10 = sphi %s642_s10, %s892_s10   ;;  %s598_s9 = sphi %s640_s9, %s891_s9  }
   0x9   : > { %s33_s17 = sadd.s32 1, %s614_s13  ;;  %s42_s18 = sadd.s32 1, %s606_s11 }
   0xa   : > { %p35_p0 = scmp.ge.s32.totalorder %s33_s17, 2  ;;  %p49_p1 = scmp.ne.s32.totalorder %s606_s11, %s602_s10 }
   0xb   : > { %p50_p2 = scmp.eq.s32.totalorder %s618_s14, 0  ;;  %p55_p3 = scmp.ne.s32.totalorder %s602_s10, %s598_s9 }
   0xc   : > { %s897_s17 = smov (%p35_p0, %s33_s17), 0  ;;  %p56_p5 = scmp.eq.s32.totalorder %s374_s15, 0 }
   0xd   : > { %p681_p4 = por %p50_p2, %p49_p1  ;;  %s37_s20 = ssub.s32 %s614_s13, %s897_s17 }
   0xe   : > { %p107_p6 = scmp.eq.s32.totalorder %s374_s15, 1  ;;  %p40_p7 = scmp.eq.s32.totalorder %s37_s20, 0 }
   0xf   : > { %p687_p8 = por %p56_p5, %p55_p3  ;;  %p113_p10 = scmp.eq.s32.totalorder %s375_s16, 1 }
  0x10   : > { %p691_p9 = por %p107_p6, %p49_p1  ;;  %p411_p13 = scmp.lt.s32.totalorder %s618_s14, 2 }
  0x11   : > { %s881_s21 = scalar_select %p687_p8, 1, 0 }
  0x12   : > { %s882_s22 = scalar_select %p691_p9, 1, 0 }
  0x13   : > { %s696_s23 = scalar_select %p40_p7, %s606_s11, %s42_s18  }
  0x14   : > { %p698_p11 = por %p113_p10, %p55_p3  ;;  %s705_s25 = sand.u32 1, %s606_s11  }
  0x15   : > { %s378_s26 = sshll.u32 %s705_s25, 4  ;;  %s392_s27 = sshll.u32 %s614_s13, 8 }
  0x16   : > { %s883_s24 = scalar_select %p698_p11, 1, 0 }
  0x17   : > { %s714_s30 = scalar_lea.hbm %s875_s0, %s392_s27  ;;  %s137_s3 = scalar_lea.vmem [#allocation2], %s378_s26 }
  0x18   : > { %s146_s4 = sshll.u32 %s137_s3, 4  ;;  %p722_p0 = pnand %p411_p13, %p681_p4  ;;  %s718_s4 = int_to_ptr.vmem [resolvable:$true] %s146_s4 }
  0x19   : > { %s134_s6 = scalar_lea.sflag [#allocation3], %s705_s25  ;;  %s472_s7 = scalar_lea.hbm %s714_s30, 256 }
  0x1a   : > { %p473_p2 = scmp.ne.s32.totalorder %s714_s30, %s472_s7  ;;  %p474_p3 = pneg %p722_p0 }
  0x1b   : > { %s477_s16 = scalar_lea.hbm %s875_s0, 512  ;;  %p478_p4 = scmp.lt.u32.totalorder %s714_s30, %s875_s0 }
  0x1c   : > { %p475_p5 = pnand %p474_p3, %p473_p2  ;;  %p479_p7 = scmp.lt.u32.totalorder %s477_s16, %s472_s7 }
  0x1d   : > { %p481_p13 = scmp.lt.u32.totalorder %s472_s7, %s714_s30 }
  0x1e   : > { %p476_p6 = pneg %p475_p5  ;;  %p480_p10 = por %p479_p7, %p478_p4 }
  0x20   : > { %p482_p12 = por %p481_p13, %p480_p10 }
  0x22   : > { %p483_p1 = pnand %p482_p12, %p476_p6 }
  0x24   : > { %486 = shalt.err (!%p483_p1)
}
  0x25   : > { %s487_s20 = scalar_lea.vmem %s718_s4, 256  ;;  %s620_s28 = smov [#allocation2]  }
  0x26   : > { %p488_p2 = scmp.ne.s32.totalorder %s718_s4, %s487_s20  ;;  %s492_s29 = sshll.u32 %s620_s28, 4  ;;  %s493_s29 = int_to_ptr.vmem [resolvable:$false] %s492_s29 }
  0x27   : > { %s494_s3 = scalar_lea.vmem %s493_s29, 512  ;;  %p495_p9 = scmp.lt.s32.totalorder %s718_s4, %s493_s29 }
  0x28   : > { %p490_p5 = pnand %p488_p2, %p474_p3  ;;  %p496_p4 = scmp.lt.s32.totalorder %s494_s3, %s487_s20 }
  0x2a   : > { %p491_p11 = pneg %p490_p5  ;;  %p497_p7 = por %p496_p4, %p495_p9 }
  0x2c   : > { %p498_p10 = pnand %p497_p7, %p491_p11 }
  0x2e   : > { %501 = shalt.err (!%p498_p10)
}
  0x2f   : > { %s621_s7 = smov 128   ;;  %s622_s8 = smov 8  }
  0x30   : > { %403 = dma.hbm_to_vmem [thread:$0]  (!%p722_p0), %s714_s30, 256, %s718_s4, %s134_s6, %s621_s7, %s621_s7, %s622_s8  }
  0x31   : > { %p177_p9 = scmp.lt.s32.totalorder %s618_s14, 3  ;;  %s764_s18 = scalar_lea.hbm %s876_s1, %s392_s27 }
  0x32   : > { %p885_p11 = scmp.ge.s32.totalorder %s618_s14, 1  ;;  %s160_s20 = scalar_lea.vmem [#allocation5], %s378_s26 }
  0x33   : > { %s169_s28 = sshll.u32 %s160_s20, 4  ;;  %s157_s30 = scalar_lea.sflag [#allocation6], %s705_s25  ;;  %s774_s28 = int_to_ptr.vmem [resolvable:$true] %s169_s28 }
  0x34   : > { %p768_p12 = pnand %p885_p11, %p177_p9  ;;  %s502_s4 = scalar_lea.hbm %s764_s18, 256 }
  0x35   : > { %p503_p1 = scmp.ne.s32.totalorder %s764_s18, %s502_s4  ;;  %s507_s29 = scalar_lea.hbm %s876_s1, 512 }
  0x36   : > { %p508_p2 = scmp.lt.u32.totalorder %s764_s18, %s876_s1  ;;  %p509_p5 = scmp.lt.u32.totalorder %s507_s29, %s502_s4 }
  0x37   : > { %p505_p6 = pnand %p503_p1, %p474_p3  ;;  %p511_p7 = scmp.lt.u32.totalorder %s502_s4, %s764_s18 }
  0x38   : > { %p510_p4 = por %p509_p5, %p508_p2 }
  0x39   : > { %p506_p13 = pneg %p505_p6 }
  0x3a   : > { %p512_p10 = por %p511_p7, %p510_p4 }
  0x3c   : > { %p513_p9 = pnand %p512_p10, %p506_p13 }
  0x3e   : > { %516 = shalt.err (!%p513_p9)
}
  0x3f   : > { %s517_s26 = scalar_lea.vmem %s774_s28, 256  ;;  %s623_s16 = smov [#allocation5]  }
  0x40   : > { %p518_p11 = scmp.ne.s32.totalorder %s774_s28, %s517_s26  ;;  %s522_s20 = sshll.u32 %s623_s16, 4  ;;  %s523_s20 = int_to_ptr.vmem [resolvable:$false] %s522_s20 }
  0x41   : > { %s524_s27 = scalar_lea.vmem %s523_s20, 512  ;;  %p525_p8 = scmp.lt.s32.totalorder %s774_s28, %s523_s20 }
  0x42   : > { %p520_p1 = pnand %p518_p11, %p474_p3  ;;  %p526_p2 = scmp.lt.s32.totalorder %s524_s27, %s517_s26 }
  0x44   : > { %p521_p6 = pneg %p520_p1  ;;  %p527_p5 = por %p526_p2, %p525_p8 }
  0x46   : > { %p528_p4 = pnand %p527_p5, %p521_p6 }
  0x48   : > { %531 = shalt.err (!%p528_p4)
}
  0x49   : > { %406 = dma.hbm_to_vmem [thread:$0]  (!%p722_p0), %s764_s18, 256, %s774_s28, %s157_s30, %s621_s7, %s621_s7, %s622_s8  }
  0x4a   : > { %181 = sbr.rel (%p768_p12) target bundleno = 123 (0x7b), region = 28  ;;  %s808_s4 = sand.u32 (!%p768_p12), 1, %s602_s10  }
  0x4b   : > { %s385_s6 = sshll.u32 (!%p768_p12), %s808_s4, 4  ;;  %s184_s29 = scalar_lea.sflag (!%p768_p12), [#allocation3], %s808_s4 }
  0x4c   : > { %s187_s5 = scalar_lea.vmem (!%p768_p12), [#allocation2], %s385_s6  ;;  %p887_p8 = scmp.ne.s32.totalorder (!%p768_p12), %s881_s21, 0 }
  0x51   : > { %585 = dma.done.wait (%p887_p8), %s184_s29, 256  }
  0x52   : > { %587 = vsyncadd (%p887_p8), %s184_s29, 4294967040  ;;  %s193_s25 = scalar_lea.sflag [#allocation6], %s808_s4  ;;  %s196_s7 = scalar_lea.vmem [#allocation5], %s385_s6 }
  0x53   : > { %589 = dma.done.wait (%p887_p8), %s193_s25, 256  }
  0x54   : > { %591 = vsyncadd (%p887_p8), %s193_s25, 4294967040  ;;  %v229_v0 = vld [vmem:[%s187_s5] sm:$0xff]  ;;  %v230_v1 = vld [vmem:[%s187_s5 + $0x8] sm:$0xff]  ;;  %s387_s21 = sshll.u32 %s808_s4, 3  ;;  %s389_s8 = sshll.u32 %s610_s12, 7 }
  0x55   : > { %v231_v2 = vld [vmem:[%s196_s7] sm:$0xff]  ;;  %v232_v3 = vld [vmem:[%s196_s7 + $0x8] sm:$0xff]  ;;  %v233_v4 = vmax.f32 %v229_v0, 0.0  ;;  %v234_v5 = vmax.f32 %v230_v1, 0.0  ;;  %s221_s18 = scalar_lea.vmem [#allocation7], %s387_s21  ;;  %s826_s3 = scalar_lea.hbm %s877_s2, %s389_s8 }
  0x56   : > { %v235_v6 = vmax.f32 %v231_v2, 0.0  ;;  %v236_v7 = vmax.f32 %v232_v3, 0.0  ;;  %s267_s19 = sshll.u32 %s221_s18, 4  ;;  %s254_s15 = scalar_lea.sflag [#allocation4], %s808_s4  ;;  %s828_s19 = int_to_ptr.vmem [resolvable:$true] %s267_s19 }
  0x57   : > { %464 = vlog2.f32 %v233_v4  ;;  %s532_s26 = scalar_lea.vmem %s828_s19, 128  ;;  %p888_p3 = scmp.ne.s32.totalorder %s882_s22, 0 }
  0x58   : > { %466 = vlog2.f32 %v234_v5  ;;  %p533_p0 = scmp.ne.s32.totalorder %s828_s19, %s532_s26  ;;  %s624_s12 = smov [#allocation7]  }
  0x59   : > { %468 = vlog2.f32 %v235_v6  ;;  %s536_s16 = sshll.u32 %s624_s12, 4  ;;  %s537_s16 = int_to_ptr.vmem [resolvable:$false] %s536_s16 }
  0x5a   : > { %470 = vlog2.f32 %v236_v7  ;;  %p534_p12 = pnand %p533_p0, %p888_p3  ;;  %s538_s20 = scalar_lea.vmem %s537_s16, 256 }
  0x5b   : > { %p539_p7 = scmp.lt.s32.totalorder %s828_s19, %s537_s16  ;;  %p540_p10 = scmp.lt.s32.totalorder %s538_s20, %s532_s26 }
  0x5c   : > { %p535_p13 = pneg %p534_p12 }
  0x5d   : > { %p541_p9 = por %p540_p10, %p539_p7 }
  0x5f   : > { %p542_p11 = pnand %p541_p9, %p535_p13 }
  0x61   : > { %v465_v8 = vpop.eup %464 }
  0x62   : > { %v467_v9 = vpop.eup %466  ;;  %v238_v10 = vmul.f32 0.6931472, %v465_v8 }
  0x63   : > { %v469_v11 = vpop.eup %468  ;;  %v240_v12 = vmul.f32 0.6931472, %v467_v9 }
  0x64   : > { %v471_v13 = vpop.eup %470  ;;  %v242_v14 = vmul.f32 0.6931472, %v469_v11 }
  0x65   : > { %v244_v15 = vmul.f32 0.6931472, %v471_v13 }
  0x66   : > { %v245_v16 = vsub.f32 %v238_v10, %v242_v14 }
  0x67   : > { %v246_v17 = vsub.f32 %v240_v12, %v244_v15 }
  0x68   : > { %v247_v18 = vand.u32 2147483647, %v245_v16 }
  0x69   : > { %v248_v19 = vand.u32 2147483647, %v246_v17 }
  0x6b   : > { %v250_v20 = vadd.f32 %v248_v19, %v247_v18 }
  0x6d   : > { %252 = vst [vmem:[%s221_s18] sm:$0xff] %v250_v20 }
  0x6e   : > { %545 = shalt.err (!%p542_p11)
}
  0x6f   : > { %s546_s27 = scalar_lea.hbm %s826_s3, 128  ;;  %s550_s29 = scalar_lea.hbm %s877_s2, 256 }
  0x70   : > { %p547_p1 = scmp.ne.s32.totalorder %s826_s3, %s546_s27  ;;  %p551_p5 = scmp.lt.u32.totalorder %s826_s3, %s877_s2 }
  0x71   : > { %p552_p4 = scmp.lt.u32.totalorder %s550_s29, %s546_s27  ;;  %p554_p0 = scmp.lt.u32.totalorder %s546_s27, %s826_s3 }
  0x72   : > { %p548_p6 = pnand %p547_p1, %p888_p3 }
  0x73   : > { %p553_p8 = por %p552_p4, %p551_p5 }
  0x74   : > { %p549_p2 = pneg %p548_p6 }
  0x75   : > { %p555_p12 = por %p554_p0, %p553_p8 }
  0x77   : > { %p556_p13 = pnand %p555_p12, %p549_p2 }
  0x79   : > { %559 = shalt.err (!%p556_p13)
}
  0x7a   : > { %398 = dma.vmem_to_hbm [thread:$0]  (%p888_p3), %s828_s19, 128, %s826_s3, %s254_s15  }
  0x7b PF: > { %s279_s7 = sand.u32 1, %s598_s9   ;;  %p889_p7 = scmp.ne.s32.totalorder %s883_s24, 0 }
  0x7c   : > { %p890_p10 = scmp.ge.s32.totalorder %s618_s14, 2  ;;  %s280_s21 = scalar_lea.sflag [#allocation4], %s279_s7 }
  0x7e   : > { %p408_p9 = pnand %p890_p10, %p889_p7 }
  0x80   : > { %593 = dma.done.wait (!%p408_p9), %s280_s21, 128  }
  0x81   : > { %595 = vsyncadd (!%p408_p9), %s280_s21, 4294967168  ;;  %s21_s14 = sadd.s32 1, %s618_s14   ;;  %s891_s9 = smov %s602_s10 }
  0x82   : > { %p18_p11 = scmp.ge.s32.totalorder %s21_s14, 4   ;;  %s892_s10 = smov %s606_s11 }
  0x83   : > { %s893_s11 = smov %s696_s23  ;;  %s894_s12 = smov %s614_s13 }
  0x84   : > { %s895_s13 = smov %s897_s17  ;;  %20 = sbr.rel (!%p18_p11) target bundleno = 8 (0x8), region = 90 }
  0x8b   :  { %285 = vsyncpa [#allocation3], 1 }
  0x8c   :  { %287 = vsyncpa [#allocation3 + $0x1], 1 }
  0x8d   :  { %288 = vsyncpa [#allocation6], 1 }
  0x8e   :  { %290 = vsyncpa [#allocation6 + $0x1], 1 }
  0x8f   :  { %291 = vsyncpa [#allocation4], 1 }
  0x90   :  { %293 = vsyncpa [#allocation4 + $0x1], 1 }

</bundles_post_ra>
